<compile_context>
chip_gen: v5e
topology: v5e:2x2
jax: 0.10.0
libtpu: 0.0.40
codegen_flags: <defaults>
</compile_context>

<pallas_src>
import functools

import jax
import jax.numpy as jnp
from jax import lax
from jax.experimental import pallas as pl
from jax.experimental.pallas import tpu as pltpu


def _round_up(x: int, m: int) -> int:
    return ((x + m - 1) // m) * m


def _distance_penalty_kernel(bi_ref, bj_ref, params_ref, gi_ref, gj_ref,
                             out_ref, *, tile, n_atom, n_blocks, has_pad):
    """One packed upper-triangular (bi, bj) block of the pairwise penalty.

    bi_ref/bj_ref : SMEM (num_tri,) i32  scalar-prefetched block coordinates
    params_ref    : SMEM (4,)       f32  [thresh_min, thresh_max, w1, w2]
    gi_ref        : VMEM (tile, 3)       atom rows of the i block
    gj_ref        : VMEM (8, tile)       coord-major atoms of the j block
                                         (rows 0..2 = x, y, z; rows 3..7 zero)
    out_ref       : VMEM (1, 8, 128)     per-step partial sum (broadcast scalar)
    """
    s = pl.program_id(0)
    bi = bi_ref[s]
    bj = bj_ref[s]

    gi = gi_ref[...]                      # (tile, 3)
    gj = gj_ref[...]                      # (8, tile)

    # Squared distance from explicit per-coordinate differences (accurate,
    # no |x|^2 + |y|^2 - 2<x,y> cancellation, no transposes); accumulate
    # directly so few (tile, tile) temporaries are live at once.
    dx = gi[:, 0:1] - gj[0:1, :]
    d2 = dx * dx
    dy = gi[:, 1:2] - gj[1:2, :]
    d2 = d2 + dy * dy
    dz = gi[:, 2:3] - gj[2:3, :]
    d2 = d2 + dz * dz
    d = jnp.sqrt(d2)                      # EUP; free filler under VALU load

    tmin = params_ref[0]
    tmax = params_ref[1]
    w1 = params_ref[2]
    w2 = params_ref[3]

    # Fused penalty: one pass, weights folded in.
    p = (w1 * jnp.maximum(tmin - d, 0.0)
         + w2 * jnp.maximum(d - tmax, 0.0))

    last_j = n_blocks - 1
    edge_cols = n_atom - last_j * tile    # static: valid cols in last j block

    def _store(val):
        # Lane-dense full-block store; wrapper reads element [s, 0, 0].
        out_ref[...] = jnp.full(out_ref.shape, val, dtype=jnp.float32)

    if has_pad:
        # Strictly-above-diagonal interior block: every pair is valid
        # (bi < bj <= last_j implies all rows are real atoms) -> no iotas,
        # no mask, no where.
        @pl.when(jnp.logical_and(bj > bi, bj != last_j))
        def _off_interior():
            _store(jnp.sum(p))

        # Strictly-above-diagonal edge block: only padded columns to mask.
        @pl.when(jnp.logical_and(bj > bi, bj == last_j))
        def _off_edge():
            col = lax.broadcasted_iota(jnp.int32, (tile, tile), 1)
            _store(jnp.sum(jnp.where(col < edge_cols, p, 0.0)))

        # Diagonal block: local triangular mask; dynamic column bound covers
        # the last block's padding (and via col > row also its padded rows).
        @pl.when(bj == bi)
        def _diag():
            row = lax.broadcasted_iota(jnp.int32, (tile, tile), 0)
            col = lax.broadcasted_iota(jnp.int32, (tile, tile), 1)
            limit = n_atom - bi * tile    # scalar; == tile except last block
            mask = jnp.logical_and(col > row, col < limit)
            _store(jnp.sum(jnp.where(mask, p, 0.0)))
    else:
        @pl.when(bj > bi)
        def _off():
            _store(jnp.sum(p))

        @pl.when(bj == bi)
        def _diag():
            row = lax.broadcasted_iota(jnp.int32, (tile, tile), 0)
            col = lax.broadcasted_iota(jnp.int32, (tile, tile), 1)
            _store(jnp.sum(jnp.where(col > row, p, 0.0)))


def distance_penalty(flatten_geom, thresh_min, thresh_max, w1=1.0, w2=1.0,
                     tile=None):
    """Pallas implementation of DistancePenalty.forward."""
    three_n = flatten_geom.shape[0]
    n_atom = three_n // 3
    if n_atom < 2:
        # Zero pairs -> mean over an empty set is undefined (NaN in PyTorch).
        raise ValueError("DistancePenalty requires at least 2 atoms.")

    geom = flatten_geom.reshape(n_atom, 3).astype(jnp.float32)

    if tile is None:
        # Bigger tiles amortize per-grid-step overhead; cap by generation:
        # v5e/v6e have 128 MiB physical VMEM -> tile 1024 (4 MiB temporaries),
        # v7x has only 64 MiB -> stay at 512.
        try:
            vmem_cap = pltpu.get_tpu_info().vmem_capacity_bytes
        except Exception:  # pragma: no cover - conservative fallback
            vmem_cap = 64 << 20
        max_tile = 1024 if vmem_cap >= (100 << 20) else 512
        tile = min(max_tile, _round_up(n_atom, 128))
    else:
        tile = _round_up(tile, 128)

    n_pad = _round_up(n_atom, tile)
    n_blocks = n_pad // tile
    pad = n_pad - n_atom
    has_pad = pad != 0

    # i side: atom-major rows (n_pad, 3); j side: coordinate-major (8, n_pad).
    geom_rows = jnp.pad(geom, ((0, pad), (0, 0)))
    geom_cols = jnp.pad(geom.T, ((0, 5), (0, pad)))

    # Runtime scalars in SMEM -> no recompile when thresholds/weights change.
    params = jnp.array([thresh_min, thresh_max, w1, w2], dtype=jnp.float32)

    # Packed upper-triangular block schedule (bi <= bj): only these steps run.
    bi_list, bj_list = [], []
    for i in range(n_blocks):
        for j in range(i, n_blocks):
            bi_list.append(i)
            bj_list.append(j)
    num_tri = len(bi_list)
    bi_arr = jnp.asarray(bi_list, dtype=jnp.int32)
    bj_arr = jnp.asarray(bj_list, dtype=jnp.int32)

    inv_n_pairs = 1.0 / float(n_atom * (n_atom - 1) // 2)

    # Explicit scoped-VMEM budget (v5e defaults to 16 MiB which is too tight;
    # 64 MiB covers tile=1024 temporaries, 32 MiB is ample for tile<=512).
    vmem_limit = (64 << 20) if tile >= 1024 else (32 << 20)

    kernel = functools.partial(
        _distance_penalty_kernel,
        tile=tile,
        n_atom=n_atom,
        n_blocks=n_blocks,
        has_pad=has_pad,
    )

    out = pl.pallas_call(
        kernel,
        out_shape=jax.ShapeDtypeStruct((num_tri, 8, 128), jnp.float32),
        grid_spec=pltpu.PrefetchScalarGridSpec(
            num_scalar_prefetch=2,          # bi_arr, bj_arr
            grid=(num_tri,),
            in_specs=[
                pl.BlockSpec(memory_space=pltpu.MemorySpace.SMEM),       # params
                pl.BlockSpec((tile, 3), lambda s, bi, bj: (bi[s], 0)),   # i rows
                pl.BlockSpec((8, tile), lambda s, bi, bj: (0, bj[s])),   # j cols
            ],
            out_specs=pl.BlockSpec((1, 8, 128), lambda s, bi, bj: (s, 0, 0)),
        ),
        compiler_params=pltpu.CompilerParams(
            dimension_semantics=("parallel",),
            vmem_limit_bytes=vmem_limit),
    )(bi_arr, bj_arr, params, geom_rows, geom_cols)

    # Combine per-step partial sums and apply the mean normalization.
    return jnp.sum(out[:, 0, 0]) * jnp.float32(inv_n_pairs)


def distance_penalty_ref(flatten_geom, thresh_min, thresh_max, w1=1.0, w2=1.0):
    """Pure-JAX reference mirroring the PyTorch loop."""
    n_atom = flatten_geom.shape[0] // 3
    geom = flatten_geom.reshape(n_atom, 3).astype(jnp.float32)
    diffs = geom[:, None, :] - geom[None, :, :]
    dmat = jnp.sqrt(jnp.sum(diffs * diffs, axis=-1))
    iu, ju = jnp.triu_indices(n_atom, k=1)
    d = dmat[iu, ju]
    below = jnp.maximum(thresh_min - d, 0.0).mean()
    above = jnp.maximum(d - thresh_max, 0.0).mean()
    return w1 * below + w2 * above


if __name__ == "__main__":
    key = jax.random.PRNGKey(0)
    thresh_min, thresh_max = 1.0, 2.5

    # Case 1: small molecule (single diagonal block).
    n_atom = 16
    flatten_geom = jax.random.uniform(
        key, (3 * n_atom,), dtype=jnp.float32, minval=-2.0, maxval=2.0)
    result = jax.block_until_ready(
        distance_penalty(flatten_geom, thresh_min, thresh_max))
    expected = distance_penalty_ref(flatten_geom, thresh_min, thresh_max)
    assert jnp.allclose(result, expected, rtol=1e-4, atol=1e-4), (
        f"mismatch (small): pallas={result} ref={expected}")

    # Case 2: forced tile=128 with 3 row/col blocks so the interior-offdiag,
    # edge-offdiag, interior-diag and padded-diag branches all execute.
    n_atom2 = 300
    key2 = jax.random.PRNGKey(0)
    flatten_geom2 = jax.random.uniform(
        key2, (3 * n_atom2,), dtype=jnp.float32, minval=-3.0, maxval=3.0)
    result2 = jax.block_until_ready(
        distance_penalty(flatten_geom2, thresh_min, thresh_max, tile=128))
    expected2 = distance_penalty_ref(flatten_geom2, thresh_min, thresh_max)
    assert jnp.allclose(result2, expected2, rtol=1e-4, atol=1e-4), (
        f"mismatch (multi-block): pallas={result2} ref={expected2}")

    print("KERNEL_OK")
</pallas_src>

<mosaic_0001>
module attributes {stable_mosaic.version = 11 : i64} {
  func.func @_distance_penalty_kernel(%arg0: i32, %arg1: memref<1xi32, #tpu.memory_space<smem>>, %arg2: memref<1xi32, #tpu.memory_space<smem>>, %arg3: memref<4xf32, #tpu.memory_space<smem>>, %arg4: memref<128x3xf32, #tpu.memory_space<vmem>>, %arg5: memref<8x128xf32, #tpu.memory_space<vmem>>, %arg6: memref<1x8x128xf32, #tpu.memory_space<vmem>>) attributes {dimension_semantics = [#tpu.dimension_semantics<parallel>], iteration_bounds = array<i64: 1>, scalar_prefetch = 2 : i64, scratch_operands = 0 : i64, tpu.core_type = #tpu.core_type<tc>, window_params = [{transform_indices = @transform_0, window_bounds = array<i64: 4>}, {transform_indices = @transform_1, window_bounds = array<i64: 128, 3>}, {transform_indices = @transform_2, window_bounds = array<i64: 8, 128>}, {transform_indices = @transform_3, window_bounds = array<i64: 1, 8, 128>}]} {
    %0 = arith.index_cast %arg0 : i32 to index
    %1 = memref.load %arg1[%0] : memref<1xi32, #tpu.memory_space<smem>>
    %2 = arith.index_cast %arg0 : i32 to index
    %3 = memref.load %arg2[%2] : memref<1xi32, #tpu.memory_space<smem>>
    %c0 = arith.constant 0 : index
    %c0_0 = arith.constant 0 : index
    %4 = vector.load %arg4[%c0, %c0_0] : memref<128x3xf32, #tpu.memory_space<vmem>>, vector<128x3xf32>
    %c0_1 = arith.constant 0 : index
    %c0_2 = arith.constant 0 : index
    %5 = vector.load %arg5[%c0_1, %c0_2] : memref<8x128xf32, #tpu.memory_space<vmem>>, vector<8x128xf32>
    %6 = vector.extract_strided_slice %4 {offsets = [0, 0], sizes = [128, 1], strides = [1, 1]} : vector<128x3xf32> to vector<128x1xf32>
    %7 = vector.extract_strided_slice %5 {offsets = [0, 0], sizes = [1, 128], strides = [1, 1]} : vector<8x128xf32> to vector<1x128xf32>
    %8 = vector.broadcast %6 : vector<128x1xf32> to vector<128x128xf32>
    %9 = vector.broadcast %7 : vector<1x128xf32> to vector<128x128xf32>
    %10 = arith.subf %8, %9 : vector<128x128xf32>
    %11 = arith.mulf %10, %10 : vector<128x128xf32>
    %12 = vector.extract_strided_slice %4 {offsets = [0, 1], sizes = [128, 1], strides = [1, 1]} : vector<128x3xf32> to vector<128x1xf32>
    %13 = vector.extract_strided_slice %5 {offsets = [1, 0], sizes = [1, 128], strides = [1, 1]} : vector<8x128xf32> to vector<1x128xf32>
    %14 = vector.broadcast %12 : vector<128x1xf32> to vector<128x128xf32>
    %15 = vector.broadcast %13 : vector<1x128xf32> to vector<128x128xf32>
    %16 = arith.subf %14, %15 : vector<128x128xf32>
    %17 = arith.mulf %16, %16 : vector<128x128xf32>
    %18 = arith.addf %11, %17 : vector<128x128xf32>
    %19 = vector.extract_strided_slice %4 {offsets = [0, 2], sizes = [128, 1], strides = [1, 1]} : vector<128x3xf32> to vector<128x1xf32>
    %20 = vector.extract_strided_slice %5 {offsets = [2, 0], sizes = [1, 128], strides = [1, 1]} : vector<8x128xf32> to vector<1x128xf32>
    %21 = vector.broadcast %19 : vector<128x1xf32> to vector<128x128xf32>
    %22 = vector.broadcast %20 : vector<1x128xf32> to vector<128x128xf32>
    %23 = arith.subf %21, %22 : vector<128x128xf32>
    %24 = arith.mulf %23, %23 : vector<128x128xf32>
    %25 = arith.addf %18, %24 : vector<128x128xf32>
    %26 = math.sqrt %25 : vector<128x128xf32>
    %c0_3 = arith.constant 0 : index
    %27 = memref.load %arg3[%c0_3] : memref<4xf32, #tpu.memory_space<smem>>
    %c1 = arith.constant 1 : index
    %28 = memref.load %arg3[%c1] : memref<4xf32, #tpu.memory_space<smem>>
    %c2 = arith.constant 2 : index
    %29 = memref.load %arg3[%c2] : memref<4xf32, #tpu.memory_space<smem>>
    %c3 = arith.constant 3 : index
    %30 = memref.load %arg3[%c3] : memref<4xf32, #tpu.memory_space<smem>>
    %31 = vector.broadcast %27 : f32 to vector<128x128xf32>
    %32 = arith.subf %31, %26 : vector<128x128xf32>
    %cst = arith.constant 0.000000e+00 : f32
    %33 = vector.broadcast %cst : f32 to vector<128x128xf32>
    %34 = arith.maximumf %32, %33 : vector<128x128xf32>
    %35 = vector.broadcast %29 : f32 to vector<128x128xf32>
    %36 = arith.mulf %35, %34 : vector<128x128xf32>
    %37 = vector.broadcast %28 : f32 to vector<128x128xf32>
    %38 = arith.subf %26, %37 : vector<128x128xf32>
    %cst_4 = arith.constant 0.000000e+00 : f32
    %39 = vector.broadcast %cst_4 : f32 to vector<128x128xf32>
    %40 = arith.maximumf %38, %39 : vector<128x128xf32>
    %41 = vector.broadcast %30 : f32 to vector<128x128xf32>
    %42 = arith.mulf %41, %40 : vector<128x128xf32>
    %43 = arith.addf %36, %42 : vector<128x128xf32>
    %44 = arith.cmpi sgt, %3, %1 : i32
    %c0_i32 = arith.constant 0 : i32
    %45 = arith.cmpi ne, %3, %c0_i32 : i32
    %46 = arith.andi %44, %45 : i1
    %47 = arith.extui %46 : i1 to i32
    %c0_i32_5 = arith.constant 0 : i32
    %48 = arith.cmpi ne, %47, %c0_i32_5 : i32
    scf.if %48 {
      %57 = vector.shape_cast %43 : vector<128x128xf32> to vector<1x128x128xf32>
      %cst_9 = arith.constant dense<0.000000e+00> : vector<1xf32>
      %58 = vector.multi_reduction <add>, %57, %cst_9 [1, 2] : vector<1x128x128xf32> to vector<1xf32>
      %59 = vector.shape_cast %58 : vector<1xf32> to vector<1x1x1xf32>
      %60 = vector.extract %59[0, 0, 0] : f32 from vector<1x1x1xf32>
      %61 = vector.broadcast %60 : f32 to vector<1x8x128xf32>
      %c0_10 = arith.constant 0 : index
      %c0_11 = arith.constant 0 : index
      %c0_12 = arith.constant 0 : index
      %62 = vector.load %arg6[%c0_10, %c0_11, %c0_12] : memref<1x8x128xf32, #tpu.memory_space<vmem>>, vector<1x8x128xf32>
      tpu.vector_store %arg6[%c0_10, %c0_11, %c0_12], %61 {strides = array<i32>} : memref<1x8x128xf32, #tpu.memory_space<vmem>>, vector<1x8x128xf32>,
    } else {
    }
    %49 = arith.cmpi sgt, %3, %1 : i32
    %c0_i32_6 = arith.constant 0 : i32
    %50 = arith.cmpi eq, %3, %c0_i32_6 : i32
    %51 = arith.andi %49, %50 : i1
    %52 = arith.extui %51 : i1 to i32
    %c0_i32_7 = arith.constant 0 : i32
    %53 = arith.cmpi ne, %52, %c0_i32_7 : i32
    scf.if %53 {
      %57 = tpu.iota {dimensions = array<i32: 1>} : vector<128x128xi32>
      %c16_i32 = arith.constant 16 : i32
      %58 = vector.broadcast %c16_i32 : i32 to vector<128x128xi32>
      %59 = arith.cmpi slt, %57, %58 : vector<128x128xi32>
      %cst_9 = arith.constant 0.000000e+00 : f32
      %60 = vector.broadcast %cst_9 : f32 to vector<128x128xf32>
      %61 = arith.select %59, %43, %60 : vector<128x128xi1>, vector<128x128xf32>
      %62 = vector.shape_cast %61 : vector<128x128xf32> to vector<1x128x128xf32>
      %cst_10 = arith.constant dense<0.000000e+00> : vector<1xf32>
      %63 = vector.multi_reduction <add>, %62, %cst_10 [1, 2] : vector<1x128x128xf32> to vector<1xf32>
      %64 = vector.shape_cast %63 : vector<1xf32> to vector<1x1x1xf32>
      %65 = vector.extract %64[0, 0, 0] : f32 from vector<1x1x1xf32>
      %66 = vector.broadcast %65 : f32 to vector<1x8x128xf32>
      %c0_11 = arith.constant 0 : index
      %c0_12 = arith.constant 0 : index
      %c0_13 = arith.constant 0 : index
      %67 = vector.load %arg6[%c0_11, %c0_12, %c0_13] : memref<1x8x128xf32, #tpu.memory_space<vmem>>, vector<1x8x128xf32>
      tpu.vector_store %arg6[%c0_11, %c0_12, %c0_13], %66 {strides = array<i32>} : memref<1x8x128xf32, #tpu.memory_space<vmem>>, vector<1x8x128xf32>,
    } else {
    }
    %54 = arith.cmpi eq, %3, %1 : i32
    %55 = arith.extui %54 : i1 to i32
    %c0_i32_8 = arith.constant 0 : i32
    %56 = arith.cmpi ne, %55, %c0_i32_8 : i32
    scf.if %56 {
      %57 = tpu.iota {dimensions = array<i32: 0>} : vector<128x128xi32>
      %58 = tpu.iota {dimensions = array<i32: 1>} : vector<128x128xi32>
      %c128_i32 = arith.constant 128 : i32
      %59 = arith.muli %1, %c128_i32 : i32
      %c16_i32 = arith.constant 16 : i32
      %60 = arith.subi %c16_i32, %59 : i32
      %61 = arith.cmpi sgt, %58, %57 : vector<128x128xi32>
      %62 = vector.broadcast %60 : i32 to vector<128x128xi32>
      %63 = arith.cmpi slt, %58, %62 : vector<128x128xi32>
      %64 = arith.andi %61, %63 : vector<128x128xi1>
      %cst_9 = arith.constant 0.000000e+00 : f32
      %65 = vector.broadcast %cst_9 : f32 to vector<128x128xf32>
      %66 = arith.select %64, %43, %65 : vector<128x128xi1>, vector<128x128xf32>
      %67 = vector.shape_cast %66 : vector<128x128xf32> to vector<1x128x128xf32>
      %cst_10 = arith.constant dense<0.000000e+00> : vector<1xf32>
      %68 = vector.multi_reduction <add>, %67, %cst_10 [1, 2] : vector<1x128x128xf32> to vector<1xf32>
      %69 = vector.shape_cast %68 : vector<1xf32> to vector<1x1x1xf32>
      %70 = vector.extract %69[0, 0, 0] : f32 from vector<1x1x1xf32>
      %71 = vector.broadcast %70 : f32 to vector<1x8x128xf32>
      %c0_11 = arith.constant 0 : index
      %c0_12 = arith.constant 0 : index
      %c0_13 = arith.constant 0 : index
      %72 = vector.load %arg6[%c0_11, %c0_12, %c0_13] : memref<1x8x128xf32, #tpu.memory_space<vmem>>, vector<1x8x128xf32>
      tpu.vector_store %arg6[%c0_11, %c0_12, %c0_13], %71 {strides = array<i32>} : memref<1x8x128xf32, #tpu.memory_space<vmem>>, vector<1x8x128xf32>,
    } else {
    }
    return
  }
  func.func @transform_0(%arg0: i32, %arg1: memref<1xi32, #tpu.memory_space<smem>>, %arg2: memref<1xi32, #tpu.memory_space<smem>>) -> i32 {
    %c0_i32 = arith.constant 0 : i32
    %c0_i32_0 = arith.constant 0 : i32
    return %c0_i32 : i32
  }
  func.func @transform_1(%arg0: i32, %arg1: memref<1xi32, #tpu.memory_space<smem>>, %arg2: memref<1xi32, #tpu.memory_space<smem>>) -> (i32, i32) {
    %0 = arith.index_cast %arg0 : i32 to index
    %1 = memref.load %arg1[%0] : memref<1xi32, #tpu.memory_space<smem>>
    %c0_i32 = arith.constant 0 : i32
    %c0_i32_0 = arith.constant 0 : i32
    return %1, %c0_i32 : i32, i32
  }
  func.func @transform_2(%arg0: i32, %arg1: memref<1xi32, #tpu.memory_space<smem>>, %arg2: memref<1xi32, #tpu.memory_space<smem>>) -> (i32, i32) {
    %0 = arith.index_cast %arg0 : i32 to index
    %1 = memref.load %arg2[%0] : memref<1xi32, #tpu.memory_space<smem>>
    %c0_i32 = arith.constant 0 : i32
    %c0_i32_0 = arith.constant 0 : i32
    return %c0_i32, %1 : i32, i32
  }
  func.func @transform_3(%arg0: i32, %arg1: memref<1xi32, #tpu.memory_space<smem>>, %arg2: memref<1xi32, #tpu.memory_space<smem>>) -> (i32, i32, i32) {
    %c0_i32 = arith.constant 0 : i32
    %c0_i32_0 = arith.constant 0 : i32
    %c0_i32_1 = arith.constant 0 : i32
    return %arg0, %c0_i32, %c0_i32_0 : i32, i32, i32
  }
}

</mosaic_0001>

<bundles_post_ra>
// kernel: tpu_custom_call.1
= control target key start
LH: loop header
LB: loop body
LE: loop exit
PB: predicated region body
PF: predicated region fallthrough
CT: control target
= control target key end

     0   :  { %12 = vsyncpa [#allocation7], 0  ;;  %s1787_s0 = inlined_call_operand.<no memory space> [shape: s32[1], index: 0, kind: input, shape index: {}]   ;;  %s1788_s1 = inlined_call_operand.<no memory space> [shape: s32[1], index: 1, kind: input, shape index: {}]   ;;  %s1789_s2 = inlined_call_operand.vmem [shape: f32[4], index: 2, kind: input, shape index: {}]   ;;  %s1790_s3 = inlined_call_operand.vmem [shape: f32[128,3], index: 3, kind: input, shape index: {}]   ;;  %s1791_s4 = inlined_call_operand.vmem [shape: f32[8,128], index: 4, kind: input, shape index: {}]   ;;  %s1792_s5 = inlined_call_operand.hbm [shape: f32[1,8,128], index: 5, kind: output, shape index: {}]  }
   0x1   :  { %13 = vsyncpa [#allocation6], 0  ;;  %s19_s20 = sshll.u32 %s1789_s2, 4  ;;  %s1053_s21 = smov [#allocation5]   ;;  %s20_s20 = int_to_ptr.vmem [resolvable:$true] %s19_s20 }
   0x2   :  { %22 = dma.vmem_to_smem %s20_s20, 16, %s1053_s21, [#allocation7]  }
   0x3   :  { %1049 = dma.done.wait [#allocation7], 16  }
   0x4   :  { %1050 = vsyncadd [#allocation7], 4294967280 }
   0x5   :  { %45 = sfence }
   0x6   :  { %s953_s24 = sshll.u32 %s1787_s0, 4  ;;  %v1054_v0 = vmov 0   ;;  %v1055_v17 = vmov 1   ;;  %v1056_v18 = vmov 2   ;;  %p66_p1 = scmp.lt.s32.totalorder %s1788_s1, 0 }
   0x7   :  { %974 = vset.pattern.permute.xlu2 %v1054_v0  ;;  %973 = vset.pattern.permute.xlu1 %v1054_v0  ;;  %p59_p0 = scmp.lt.s32.totalorder %s953_s24, 15  ;;  %p741_p2 = scmp.gt.s32.totalorder %s1788_s1, %s1787_s0 }
   0x8   :  { %972 = vset.pattern.permute.xlu0 %v1054_v0  ;;  %s67_s6 = scalar_select %p66_p1, %s1788_s1, 0 }
   0x9   :  { %s1809_s24 = smov (!%p59_p0, %s953_s24), 15  ;;  %p742_p3 = scmp.ne.s32.totalorder %s1788_s1, 0 }
   0xa   :  { %s954_s25 = sshll.u32 %s1809_s24, 3  ;;  %s955_s7 = sshll.u32 %s67_s6, 3 }
   0xb   :  { %s1097_s2 = scalar_lea.vmem %s1790_s3, %s954_s25  ;;  %s69_s10 = scalar_lea.vmem %s1791_s4, %s955_s7 }
   0xc   :  { %v77_v1 = vld [vmem:[%s1097_s2 + $0x20] sm:$0xff]  ;;  %v75_v2 = vld [vmem:[%s1097_s2 + $0x10] sm:$0xff]  ;;  %v78_v4 = vld [vmem:[%s1097_s2 + $0x28] sm:$0xff]  ;;  %p1184_p4 = pnand %p742_p3, %p741_p2  ;;  %s1207_s21 = sld [smem:[#allocation5]] }
   0xd   :  { %v73_v3 = vld [vmem:[%s1097_s2] sm:$0xff]  ;;  %112 = vperm.xlu2 %974, %v77_v1   ;;  %102 = vperm.xlu1 %973, %v75_v2   ;;  %v76_v5 = vld [vmem:[%s1097_s2 + $0x18] sm:$0xff]  ;;  %v74_v6 = vld [vmem:[%s1097_s2 + $0x8] sm:$0xff]  ;;  %s1216_s22 = sld [smem:[#allocation5 + $0x2]] }
   0xe   :  { %92 = vperm.xlu0 %972, %v73_v3   ;;  %v81_v7 = vld [vmem:[%s1097_s2 + $0x40] sm:$0xff]  ;;  %v80_v8 = vld [vmem:[%s1097_s2 + $0x38] sm:$0xff]  ;;  %v79_v9 = vld [vmem:[%s1097_s2 + $0x30] sm:$0xff]  ;;  %s1220_s23 = sld [smem:[#allocation5 + $0x1]] }
   0xf   :  { %v84_v10 = vld [vmem:[%s1097_s2 + $0x58] sm:$0xff]  ;;  %v83_v11 = vld [vmem:[%s1097_s2 + $0x50] sm:$0xff]  ;;  %v82_v12 = vld [vmem:[%s1097_s2 + $0x48] sm:$0xff]  ;;  %s1226_s24 = sld [smem:[#allocation5 + $0x3]] }
  0x10   :  { %v87_v13 = vld [vmem:[%s1097_s2 + $0x70] sm:$0xff]  ;;  %v86_v14 = vld [vmem:[%s1097_s2 + $0x68] sm:$0xff]  ;;  %v85_v15 = vld [vmem:[%s1097_s2 + $0x60] sm:$0xff] }
  0x11   :  { %v88_v16 = vld [vmem:[%s1097_s2 + $0x78] sm:$0xff]  ;;  %v89_v27 = vld [vmem:[%s69_s10] sm:$0xff] }
  0x12   :  { %v1134_v29 = vperm.slane %v89_v27, 0  ;;  %v1137_v31 = vperm.slane %v89_v27, 1 }
  0x15   :  { %117 = vperm.xlu2 %974, %v78_v4   ;;  %107 = vperm.xlu1 %973, %v76_v5  }
  0x16   :  { %97 = vperm.xlu0 %972, %v74_v6  }
  0x1d   :  { %132 = vperm.xlu2 %974, %v81_v7   ;;  %127 = vperm.xlu1 %973, %v80_v8  }
  0x1e   :  { %122 = vperm.xlu0 %972, %v79_v9  }
  0x25   :  { %147 = vperm.xlu2 %974, %v84_v10   ;;  %142 = vperm.xlu1 %973, %v83_v11  }
  0x26   :  { %137 = vperm.xlu0 %972, %v82_v12  }
  0x2d   :  { %162 = vperm.xlu2 %974, %v87_v13   ;;  %157 = vperm.xlu1 %973, %v86_v14  }
  0x2e   :  { %152 = vperm.xlu0 %972, %v85_v15  }
  0x35   :  { %976 = vset.pattern.permute.xlu2 %v1055_v17  ;;  %975 = vset.pattern.permute.xlu1 %v1055_v17 }
  0x36   :  { %167 = vperm.xlu0 %972, %v88_v16   ;;  %208 = vperm.xlu2 %976, %v74_v6  }
  0x37   :  { %204 = vperm.xlu1 %975, %v73_v3  }
  0x3e   :  { %977 = vset.pattern.permute.xlu0 %v1055_v17  ;;  %220 = vperm.xlu2 %976, %v77_v1  }
  0x3f   :  { %216 = vperm.xlu1 %975, %v76_v5   ;;  %212 = vperm.xlu0 %977, %v75_v2  }
  0x46   :  { %228 = vperm.xlu2 %976, %v79_v9  }
  0x47   :  { %224 = vperm.xlu1 %975, %v78_v4   ;;  %232 = vperm.xlu0 %977, %v80_v8  }
  0x4e   :  { %240 = vperm.xlu2 %976, %v82_v12  }
  0x4f   :  { %236 = vperm.xlu1 %975, %v81_v7   ;;  %244 = vperm.xlu0 %977, %v83_v11  }
  0x56   :  { %252 = vperm.xlu2 %976, %v85_v15  }
  0x57   :  { %248 = vperm.xlu1 %975, %v84_v10   ;;  %256 = vperm.xlu0 %977, %v86_v14  }
  0x5e   :  { %264 = vperm.xlu2 %976, %v88_v16  }
  0x5f   :  { %260 = vperm.xlu1 %975, %v87_v13   ;;  %978 = vset.pattern.permute.xlu0 %v1056_v18 }
  0x60   :  { %317 = vperm.xlu0 %978, %v73_v3  }
  0x66   :  { %980 = vset.pattern.permute.xlu2 %v1056_v18 }
  0x67   :  { %979 = vset.pattern.permute.xlu1 %v1056_v18  ;;  %v113_v19 = vpop.permute.xlu2 %112  ;;  %325 = vperm.xlu2 %980, %v75_v2  }
  0x68   :  { %321 = vperm.xlu1 %979, %v74_v6   ;;  %337 = vperm.xlu0 %978, %v78_v4   ;;  %v175_v39 = vsub.f32 %v113_v19, %v1134_v29 }
  0x6a   :  { %v191_v44 = vmul.f32 %v175_v39, %v175_v39 }
  0x6f   :  { %v1115_v20 = vpop.permute.xlu2 %117  ;;  %333 = vperm.xlu2 %980, %v77_v1  }
  0x70   :  { %329 = vperm.xlu1 %979, %v76_v5   ;;  %349 = vperm.xlu0 %978, %v81_v7   ;;  %v176_v2 = vsub.f32 %v1115_v20, %v1134_v29 }
  0x72   :  { %v192_v7 = vmul.f32 %v176_v2, %v176_v2 }
  0x77   :  { %v1117_v21 = vpop.permute.xlu2 %132  ;;  %345 = vperm.xlu2 %980, %v80_v8  }
  0x78   :  { %341 = vperm.xlu1 %979, %v79_v9   ;;  %361 = vperm.xlu0 %978, %v84_v10  }
  0x7f   :  { %v1125_v22 = vpop.permute.xlu2 %147  ;;  %v1127_v23 = vpop.permute.xlu1 %102  ;;  %357 = vperm.xlu2 %980, %v83_v11  }
  0x80   :  { %353 = vperm.xlu1 %979, %v82_v12   ;;  %373 = vperm.xlu0 %978, %v87_v13   ;;  %v93_v24 = vpop.permute.xlu0 %92  ;;  %v173_v11 = vsub.f32 %v1127_v23, %v1134_v29  ;;  %v1194_v12 = vperm.slane %v89_v27, 2  ;;  %v179_v23 = vsub.f32 %v1117_v21, %v1134_v29 }
  0x81   :  { %v171_v50 = vsub.f32 %v93_v24, %v1134_v29 }
  0x82   :  { %v189_v17 = vmul.f32 %v173_v11, %v173_v11 }
  0x83   :  { %v187_v55 = vmul.f32 %v171_v50, %v171_v50 }
  0x87   :  { %v1132_v25 = vpop.permute.xlu2 %162  ;;  %v108_v26 = vpop.permute.xlu1 %107  ;;  %369 = vperm.xlu2 %980, %v86_v14  }
  0x88   :  { %365 = vperm.xlu1 %979, %v85_v15   ;;  %v98_v28 = vpop.permute.xlu0 %97  ;;  %v174_v58 = vsub.f32 %v108_v26, %v1134_v29 }
  0x89   :  { %v172_v30 = vsub.f32 %v98_v28, %v1134_v29 }
  0x8a   :  { %v190_v63 = vmul.f32 %v174_v58, %v174_v58 }
  0x8b   :  { %v188_v35 = vmul.f32 %v172_v30, %v172_v30  ;;  %v182_v30 = vsub.f32 %v1125_v22, %v1134_v29 }
  0x8f   :  { %v1139_v32 = vpop.permute.xlu1 %127 }
  0x90   :  { %377 = vperm.xlu1 %979, %v88_v16   ;;  %v1141_v33 = vpop.permute.xlu0 %122  ;;  %v209_v34 = vpop.permute.xlu2 %208 }
  0x91   :  { %v269_v36 = vsub.f32 %v209_v34, %v1137_v31  ;;  %v177_v39 = vsub.f32 %v1141_v33, %v1134_v29 }
  0x93   :  { %v285_v37 = vmul.f32 %v269_v36, %v269_v36  ;;  %v185_v36 = vsub.f32 %v1132_v25, %v1134_v29 }
  0x95   :  { %v1144_v38 = vadd.f32 %v285_v37, %v188_v35  ;;  %v178_v37 = vsub.f32 %v1139_v32, %v1134_v29 }
  0x97   :  { %v143_v40 = vpop.permute.xlu1 %142 }
  0x98   :  { %v1147_v41 = vpop.permute.xlu0 %137  ;;  %v221_v42 = vpop.permute.xlu2 %220  ;;  %v181_v21 = vsub.f32 %v143_v40, %v1134_v29 }
  0x99   :  { %v272_v43 = vsub.f32 %v221_v42, %v1137_v31 }
  0x9b   :  { %v288_v45 = vmul.f32 %v272_v43, %v272_v43  ;;  %v195_v43 = vmul.f32 %v179_v23, %v179_v23 }
  0x9d   :  { %v1150_v46 = vadd.f32 %v288_v45, %v191_v44  ;;  %v180_v44 = vsub.f32 %v1147_v41, %v1134_v29  ;;  %v1228_v45 = vmul.f32 %v182_v30, %v182_v30 }
  0x9f   :  { %v158_v47 = vpop.permute.xlu1 %157 }
  0xa0   :  { %v153_v48 = vpop.permute.xlu0 %152  ;;  %v229_v49 = vpop.permute.xlu2 %228  ;;  %v184_v25 = vsub.f32 %v158_v47, %v1134_v29  ;;  %v197_v47 = vmul.f32 %v181_v21, %v181_v21 }
  0xa1   :  { %v274_v34 = vsub.f32 %v229_v49, %v1137_v31  ;;  %v183_v32 = vsub.f32 %v153_v48, %v1134_v29 }
  0xa3   :  { %v290_v49 = vmul.f32 %v274_v34, %v274_v34 }
  0xa8   :  { %v1153_v51 = vpop.permute.xlu0 %167  ;;  %v241_v52 = vpop.permute.xlu2 %240 }
  0xa9   :  { %v205_v53 = vpop.permute.xlu1 %204  ;;  %v277_v40 = vsub.f32 %v241_v52, %v1137_v31  ;;  %v196_v52 = vmul.f32 %v180_v44, %v180_v44 }
  0xaa   :  { %v268_v54 = vsub.f32 %v205_v53, %v1137_v31  ;;  %v1234_v53 = vmul.f32 %v185_v36, %v185_v36 }
  0xab   :  { %v293_v2 = vmul.f32 %v277_v40, %v277_v40 }
  0xac   :  { %v284_v56 = vmul.f32 %v268_v54, %v268_v54  ;;  %v194_v54 = vmul.f32 %v178_v37, %v178_v37 }
  0xae   :  { %v1156_v57 = vadd.f32 %v284_v56, %v187_v55  ;;  %v193_v55 = vmul.f32 %v177_v39, %v177_v39 }
  0xb0   :  { %v1159_v59 = vpop.permute.xlu2 %252 }
  0xb1   :  { %v217_v60 = vpop.permute.xlu1 %216  ;;  %v213_v61 = vpop.permute.xlu0 %212 }
  0xb2   :  { %v271_v62 = vsub.f32 %v217_v60, %v1137_v31  ;;  %v270_v9 = vsub.f32 %v213_v61, %v1137_v31  ;;  %v200_v60 = vmul.f32 %v184_v25, %v184_v25 }
  0xb4   :  { %v287_v0 = vmul.f32 %v271_v62, %v271_v62  ;;  %v286_v13 = vmul.f32 %v270_v9, %v270_v9 }
  0xb6   :  { %v1162_v1 = vadd.f32 %v287_v0, %v190_v63  ;;  %v302_v19 = vadd.f32 %v286_v13, %v189_v17  ;;  %v1243_v0 = vadd.f32 %v290_v49, %v193_v55  ;;  %v1256_v17 = vsub.f32 %v1153_v51, %v1134_v29 }
  0xb8   :  { %v1175_v3 = vpop.permute.xlu2 %264 }
  0xb9   :  { %v225_v4 = vpop.permute.xlu1 %224  ;;  %v233_v5 = vpop.permute.xlu0 %232  ;;  %v1279_v37 = vsub.f32 %v1175_v3, %v1137_v31 }
  0xba   :  { %v273_v6 = vsub.f32 %v225_v4, %v1137_v31  ;;  %v275_v22 = vsub.f32 %v233_v5, %v1137_v31 }
  0xbc   :  { %v289_v8 = vmul.f32 %v273_v6, %v273_v6  ;;  %v291_v48 = vmul.f32 %v275_v22, %v275_v22 }
  0xbe   :  { %v1190_v10 = vadd.f32 %v289_v8, %v192_v7  ;;  %v1249_v7 = vstv %s1207_s21  ;;  %v1252_v8 = vstv %s1216_s22  ;;  %v307_v11 = vadd.f32 %v291_v48, %v194_v54 }
  0xc1   :  { %v237_v14 = vpop.permute.xlu1 %236  ;;  %v245_v15 = vpop.permute.xlu0 %244 }
  0xc2   :  { %v326_v16 = vpop.permute.xlu2 %325  ;;  %v276_v56 = vsub.f32 %v237_v14, %v1137_v31  ;;  %v278_v6 = vsub.f32 %v245_v15, %v1137_v31  ;;  %v1264_v15 = vadd.f32 %v293_v2, %v196_v52 }
  0xc3   :  { %v383_v18 = vsub.f32 %v326_v16, %v1194_v12 }
  0xc4   :  { %v292_v13 = vmul.f32 %v276_v56, %v276_v56  ;;  %v294_v29 = vmul.f32 %v278_v6, %v278_v6 }
  0xc5   :  { %v399_v20 = vmul.f32 %v383_v18, %v383_v18  ;;  %v1259_v18 = vstv %s1220_s23 }
  0xc6   :  { %v1281_v39 = vadd.f32 %v292_v13, %v195_v43 }
  0xc7   :  { %v1197_v24 = vadd.f32 %v399_v20, %v302_v19  ;;  %v1262_v19 = vstv %s1226_s24 }
  0xc9   :  { %981 = vrsqrt.f32 %v1197_v24  ;;  %v1200_v26 = vpop.permute.xlu1 %248  ;;  %v257_v28 = vpop.permute.xlu0 %256  ;;  %vm460_vm0 = vcmp.eq.f32.partialorder %v1197_v24, inf  ;;  %vm462_vm1 = vcmp.eq.f32.partialorder %v1197_v24, 0.0 }
  0xca   :  { %v334_v27 = vpop.permute.xlu2 %333 }
  0xcb   :  { %v385_v35 = vsub.f32 %v334_v27, %v1194_v12  ;;  %v281_v27 = vsub.f32 %v257_v28, %v1137_v31 }
  0xcd   :  { %v401_v42 = vmul.f32 %v385_v35, %v385_v35  ;;  %v1274_v35 = vsub.f32 %v1159_v59, %v1137_v31  ;;  %v279_v59 = vsub.f32 %v1200_v26, %v1137_v31  ;;  %v297_v3 = vmul.f32 %v281_v27, %v281_v27 }
  0xcf   :  { %v982_v33 = vpop.eup %981  ;;  %v1232_v50 = vadd.f32 %v401_v42, %v1150_v46  ;;  %v1241_v46 = vmul.f32 %v183_v32, %v183_v32  ;;  %v463_v42 = vand.u32 2147483648, %v1197_v24  ;;  %v310_v32 = vadd.f32 %v294_v29, %v197_v47 }
  0xd0   :  { %v454_v41 = vmul.f32 %v982_v33, %v1197_v24  ;;  %v1297_v56 = vmul.f32 %v279_v59, %v279_v59 }
  0xd1   :  { %983 = vrsqrt.f32 %v1232_v50  ;;  %v1239_v58 = vpop.permute.xlu1 %260  ;;  %vm484_vm2 = vcmp.eq.f32.partialorder %v1232_v50, inf  ;;  %vm486_vm3 = vcmp.eq.f32.partialorder %v1232_v50, 0.0 }
  0xd2   :  { %v455_v61 = vmul.f32 %v982_v33, %v454_v41  ;;  %v346_v62 = vpop.permute.xlu2 %345  ;;  %v318_v63 = vpop.permute.xlu0 %317 }
  0xd3   :  { %v388_v4 = vsub.f32 %v346_v62, %v1194_v12  ;;  %v381_v5 = vsub.f32 %v318_v63, %v1194_v12  ;;  %v313_v62 = vadd.f32 %v297_v3, %v200_v60 }
  0xd4   :  { %v456_v9 = vmul.f32 0.5, %v455_v61 }
  0xd5   :  { %v404_v14 = vmul.f32 %v388_v4, %v388_v4  ;;  %v397_v16 = vmul.f32 %v381_v5, %v381_v5 }
  0xd6   :  { %v457_v20 = vsub.f32 1.5, %v456_v9 }
  0xd7   :  { %v984_v23 = vpop.eup %983  ;;  %v1267_v30 = vadd.f32 %v404_v14, %v307_v11  ;;  %v1270_v34 = vadd.f32 %v397_v16, %v1156_v57  ;;  %v487_v16 = vand.u32 2147483648, %v1232_v50 }
  0xd8   :  { %v458_v51 = vmul.f32 %v982_v33, %v457_v20  ;;  %v478_v36 = vmul.f32 %v984_v23, %v1232_v50 }
  0xd9   :  { %985 = vrsqrt.f32 %v1267_v30  ;;  %vm520_vm4 = vcmp.eq.f32.partialorder %v1267_v30, inf  ;;  %vm522_vm5 = vcmp.eq.f32.partialorder %v1267_v30, 0.0  ;;  %vm436_vm6 = vcmp.eq.f32.partialorder %v1270_v34, inf }
  0xda   :  { %v459_v57 = vmul.f32 %v458_v51, %v1197_v24  ;;  %v479_v28 = vmul.f32 %v984_v23, %v478_v36  ;;  %987 = vrsqrt.f32 %v1270_v34  ;;  %v358_v21 = vpop.permute.xlu2 %357  ;;  %v322_v22 = vpop.permute.xlu1 %321  ;;  %vm438_vm7 = vcmp.eq.f32.partialorder %v1270_v34, 0.0 }
  0xdb   :  { %v391_v43 = vsub.f32 %v358_v21, %v1194_v12  ;;  %v382_v44 = vsub.f32 %v322_v22, %v1194_v12  ;;  %v338_v25 = vpop.permute.xlu0 %337 }
  0xdc   :  { %v461_v33 = vsel %vm460_vm0, %v1197_v24, %v459_v57  ;;  %v480_v49 = vmul.f32 0.5, %v479_v28  ;;  %v386_v55 = vsub.f32 %v338_v25, %v1194_v12  ;;  %v523_v57 = vand.u32 2147483648, %v1267_v30 }
  0xdd   :  { %v464_v26 = vsel %vm462_vm1, %v463_v42, %v461_v33  ;;  %v407_v40 = vmul.f32 %v391_v43, %v391_v43  ;;  %v398_v54 = vmul.f32 %v382_v44, %v382_v44 }
  0xde   :  { %v628_v41 = vsub.f32 %v1249_v7, %v464_v26  ;;  %v678_v48 = vsub.f32 %v464_v26, %v1259_v18  ;;  %v481_v52 = vsub.f32 1.5, %v480_v49  ;;  %v402_v60 = vmul.f32 %v386_v55, %v386_v55 }
  0xdf   :  { %v986_v61 = vpop.eup %985  ;;  %v1300_v47 = vadd.f32 %v407_v40, %v310_v32  ;;  %v1303_v24 = vadd.f32 %v398_v54, %v1144_v38  ;;  %v439_v40 = vand.u32 2147483648, %v1270_v34 }
  0xe0   :  { %v988_v63 = vpop.eup %987  ;;  %v644_v2 = vmax.f32 %v628_v41, 0.0  ;;  %v694_v4 = vmax.f32 %v678_v48, 0.0  ;;  %v482_v5 = vmul.f32 %v984_v23, %v481_v52  ;;  %v514_v6 = vmul.f32 %v986_v61, %v1267_v30 }
  0xe1   :  { %v430_v9 = vmul.f32 %v988_v63, %v1270_v34  ;;  %989 = vrsqrt.f32 %v1300_v47  ;;  %v1325_v28 = vadd.f32 %v402_v60, %v1190_v10  ;;  %v559_v54 = vand.u32 2147483648, %v1300_v47 }
  0xe2   :  { %v661_v11 = vmul.f32 %v1252_v8, %v644_v2  ;;  %v711_v13 = vmul.f32 %v1262_v19, %v694_v4  ;;  %v483_v38 = vmul.f32 %v482_v5, %v1232_v50  ;;  %v515_v14 = vmul.f32 %v986_v61, %v514_v6  ;;  %v370_v23 = vpop.permute.xlu2 %369  ;;  %v330_v43 = vpop.permute.xlu1 %329 }
  0xe3   :  { %v431_v20 = vmul.f32 %v988_v63, %v430_v9  ;;  %991 = vrsqrt.f32 %v1303_v24  ;;  %v394_v3 = vsub.f32 %v370_v23, %v1194_v12  ;;  %vm556_vm8 = vcmp.eq.f32.partialorder %v1300_v47, inf }
  0xe4   :  { %v1315_v27 = vadd.f32 %v711_v13, %v661_v11  ;;  %v485_v29 = vsel %vm484_vm2, %v1232_v50, %v483_v38  ;;  %v516_v51 = vmul.f32 0.5, %v515_v14  ;;  %993 = vrsqrt.f32 %v1325_v28 }
  0xe5   :  { %v488_v36 = vsel %vm486_vm3, %v487_v16, %v485_v29  ;;  %v432_v59 = vmul.f32 0.5, %v431_v20  ;;  %v410_v55 = vmul.f32 %v394_v3, %v394_v3  ;;  %vm558_vm9 = vcmp.eq.f32.partialorder %v1300_v47, 0.0  ;;  %v350_v16 = vpop.permute.xlu0 %349 }
  0xe6   :  { %v630_v21 = vsub.f32 %v1249_v7, %v488_v36  ;;  %v680_v22 = vsub.f32 %v488_v36, %v1259_v18  ;;  %v517_v42 = vsub.f32 1.5, %v516_v51  ;;  %v384_v11 = vsub.f32 %v330_v43, %v1194_v12 }
  0xe7   :  { %v990_v44 = vpop.eup %989  ;;  %v433_v25 = vsub.f32 1.5, %v432_v59  ;;  %v1343_v5 = vadd.f32 %v410_v55, %v313_v62  ;;  %vm448_vm10 = vcmp.eq.f32.partialorder %v1303_v24, inf  ;;  %vm450_vm11 = vcmp.eq.f32.partialorder %v1303_v24, 0.0 }
  0xe8   :  { %v646_v50 = vmax.f32 %v630_v21, 0.0  ;;  %v696_v32 = vmax.f32 %v680_v22, 0.0  ;;  %v518_v10 = vmul.f32 %v986_v61, %v517_v42  ;;  %v550_v33 = vmul.f32 %v990_v44, %v1300_v47 }
  0xe9   :  { %v992_v49 = vpop.eup %991  ;;  %v434_v26 = vmul.f32 %v988_v63, %v433_v25  ;;  %v451_v63 = vand.u32 2147483648, %v1303_v24  ;;  %995 = vrsqrt.f32 %v1343_v5  ;;  %v400_v3 = vmul.f32 %v384_v11, %v384_v11 }
  0xea   :  { %v663_v41 = vmul.f32 %v1252_v8, %v646_v50  ;;  %v713_v48 = vmul.f32 %v1262_v19, %v696_v32  ;;  %v519_v52 = vmul.f32 %v518_v10, %v1267_v30  ;;  %v551_v2 = vmul.f32 %v990_v44, %v550_v33  ;;  %v994_v13 = vpop.eup %993  ;;  %v342_v43 = vpop.permute.xlu1 %341 }
  0xeb   :  { %v435_v4 = vmul.f32 %v434_v26, %v1270_v34  ;;  %v442_v61 = vmul.f32 %v992_v49, %v1303_v24  ;;  %v490_v59 = vmul.f32 %v994_v13, %v1325_v28  ;;  %vm496_vm12 = vcmp.eq.f32.partialorder %v1325_v28, inf }
  0xec   :  { %v1345_v6 = vadd.f32 %v713_v48, %v663_v41  ;;  %v521_v9 = vsel %vm520_vm4, %v1267_v30, %v519_v52  ;;  %v552_v60 = vmul.f32 0.5, %v551_v2  ;;  %vm498_vm13 = vcmp.eq.f32.partialorder %v1325_v28, 0.0 }
  0xed   :  { %v524_v38 = vsel %vm522_vm5, %v523_v57, %v521_v9  ;;  %v437_v62 = vsel %vm436_vm6, %v1270_v34, %v435_v4  ;;  %v443_v14 = vmul.f32 %v992_v49, %v442_v61  ;;  %v491_v32 = vmul.f32 %v994_v13, %v490_v59 }
  0xee   :  { %v633_v20 = vsub.f32 %v1249_v7, %v524_v38  ;;  %v683_v23 = vsub.f32 %v524_v38, %v1259_v18  ;;  %v440_v29 = vsel %vm438_vm7, %v439_v40, %v437_v62  ;;  %v553_v51 = vsub.f32 1.5, %v552_v60 }
  0xef   :  { %v626_v30 = vsub.f32 %v1249_v7, %v440_v29  ;;  %v676_v36 = vsub.f32 %v440_v29, %v1259_v18  ;;  %v444_v57 = vmul.f32 0.5, %v443_v14  ;;  %v389_v40 = vsub.f32 %v350_v16, %v1194_v12  ;;  %v996_v55 = vpop.eup %995 }
  0xf0   :  { %v649_v21 = vmax.f32 %v633_v20, 0.0  ;;  %v699_v22 = vmax.f32 %v683_v23, 0.0  ;;  %v554_v42 = vmul.f32 %v990_v44, %v553_v51  ;;  %v492_v52 = vmul.f32 0.5, %v491_v32 }
  0xf1   :  { %v642_v25 = vmax.f32 %v626_v30, 0.0  ;;  %v692_v34 = vmax.f32 %v676_v36, 0.0  ;;  %v445_v50 = vsub.f32 1.5, %v444_v57  ;;  %v586_v61 = vmul.f32 %v996_v55, %v1343_v5 }
  0xf2   :  { %v666_v10 = vmul.f32 %v1252_v8, %v649_v21  ;;  %v716_v33 = vmul.f32 %v1262_v19, %v699_v22  ;;  %v555_v26 = vmul.f32 %v554_v42, %v1300_v47  ;;  %v493_v38 = vsub.f32 1.5, %v492_v52 }
  0xf3   :  { %v659_v41 = vmul.f32 %v1252_v8, %v642_v25  ;;  %v709_v44 = vmul.f32 %v1262_v19, %v692_v34  ;;  %v446_v48 = vmul.f32 %v992_v49, %v445_v50  ;;  %v587_v14 = vmul.f32 %v996_v55, %v586_v61  ;;  %v354_v25 = vpop.permute.xlu1 %353 }
  0xf4   :  { %v1374_v2 = vadd.f32 %v716_v33, %v666_v10  ;;  %v557_v4 = vsel %vm556_vm8, %v1300_v47, %v555_v26  ;;  %v1389_v16 = vadd.f32 %v400_v3, %v1162_v1  ;;  %v494_v23 = vmul.f32 %v994_v13, %v493_v38 }
  0xf5   :  { %v1381_v9 = vadd.f32 %v709_v44, %v659_v41  ;;  %v560_v60 = vsel %vm558_vm9, %v559_v54, %v557_v4  ;;  %v447_v11 = vmul.f32 %v446_v48, %v1303_v24  ;;  %v499_v29 = vand.u32 2147483648, %v1325_v28  ;;  %v362_v54 = vpop.permute.xlu0 %361 }
  0xf6   :  { %v636_v49 = vsub.f32 %v1249_v7, %v560_v60  ;;  %v686_v62 = vsub.f32 %v560_v60, %v1259_v18  ;;  %v405_v47 = vmul.f32 %v389_v40, %v389_v40  ;;  %v588_v57 = vmul.f32 0.5, %v587_v14 }
  0xf7   :  { %v449_v20 = vsel %vm448_vm10, %v1303_v24, %v447_v11  ;;  %v495_v21 = vmul.f32 %v494_v23, %v1325_v28  ;;  %997 = vrsqrt.f32 %v1389_v16  ;;  %v387_v3 = vsub.f32 %v342_v43, %v1194_v12 }
  0xf8   :  { %v652_v51 = vmax.f32 %v636_v49, 0.0  ;;  %v702_v30 = vmax.f32 %v686_v62, 0.0  ;;  %v452_v36 = vsel %vm450_vm11, %v451_v63, %v449_v20  ;;  %v589_v42 = vsub.f32 1.5, %v588_v57 }
  0xf9   :  { %v627_v59 = vsub.f32 %v1249_v7, %v452_v36  ;;  %v677_v1 = vsub.f32 %v452_v36, %v1259_v18  ;;  %v497_v63 = vsel %vm496_vm12, %v1325_v28, %v495_v21  ;;  %vm592_vm14 = vcmp.eq.f32.partialorder %v1343_v5, inf }
  0xfa   :  { %v669_v13 = vmul.f32 %v1252_v8, %v652_v51  ;;  %v719_v22 = vmul.f32 %v1262_v19, %v702_v30  ;;  %v500_v32 = vsel %vm498_vm13, %v499_v29, %v497_v63  ;;  %v590_v10 = vmul.f32 %v996_v55, %v589_v42 }
  0xfb   :  { %v643_v34 = vmax.f32 %v627_v59, 0.0  ;;  %v693_v24 = vmax.f32 %v677_v1, 0.0  ;;  %v595_v33 = vand.u32 2147483648, %v1343_v5  ;;  %v631_v40 = vsub.f32 %v1249_v7, %v500_v32  ;;  %v366_v21 = vpop.permute.xlu1 %365 }
  0xfc   :  { %v1408_v50 = vadd.f32 %v719_v22, %v669_v13  ;;  %v681_v41 = vsub.f32 %v500_v32, %v1259_v18  ;;  %v591_v44 = vmul.f32 %v590_v10, %v1343_v5  ;;  %v1419_v48 = vadd.f32 %v405_v47, %v1281_v39 }
  0xfd   :  { %v660_v26 = vmul.f32 %v1252_v8, %v643_v34  ;;  %v710_v43 = vmul.f32 %v1262_v19, %v693_v24  ;;  %v403_v52 = vmul.f32 %v387_v3, %v387_v3  ;;  %v392_v28 = vsub.f32 %v362_v54, %v1194_v12  ;;  %v998_v4 = vpop.eup %997  ;;  %v374_v23 = vpop.permute.xlu0 %373 }
  0xfe   :  { %v647_v61 = vmax.f32 %v631_v40, 0.0  ;;  %v697_v60 = vmax.f32 %v681_v41, 0.0  ;;  %v390_v11 = vsub.f32 %v354_v25, %v1194_v12  ;;  %v593_v38 = vsel %vm592_vm14, %v1343_v5, %v591_v44 }
  0xff   :  { %v1422_v55 = vadd.f32 %v710_v43, %v660_v26  ;;  %vm594_vm15 = vcmp.eq.f32.partialorder %v1343_v5, 0.0  ;;  %v466_v49 = vmul.f32 %v998_v4, %v1389_v16  ;;  %999 = vrsqrt.f32 %v1419_v48 }
 0x100   :  { %v282_v39 = vsub.f32 %v1239_v58, %v1137_v31  ;;  %v664_v62 = vmul.f32 %v1252_v8, %v647_v61  ;;  %v714_v14 = vmul.f32 %v1262_v19, %v697_v60  ;;  %v596_v20 = vsel %vm594_vm15, %v595_v33, %v593_v38 }
 0x101   :  { %v311_v29 = vadd.f32 %v1297_v56, %v1228_v45  ;;  %v639_v47 = vsub.f32 %v1249_v7, %v596_v20  ;;  %v689_v5 = vsub.f32 %v596_v20, %v1259_v18  ;;  %v467_v54 = vmul.f32 %v998_v4, %v466_v49 }
 0x102   :  { %v1439_v51 = vadd.f32 %v714_v14, %v664_v62  ;;  %v1442_v30 = vadd.f32 %v403_v52, %v1243_v0  ;;  %v408_v31 = vmul.f32 %v392_v28, %v392_v28  ;;  %v406_v58 = vmul.f32 %v390_v11, %v390_v11 }
 0x103   :  { %v655_v36 = vmax.f32 %v639_v47, 0.0  ;;  %v705_v57 = vmax.f32 %v689_v5, 0.0  ;;  %v468_v59 = vmul.f32 0.5, %v467_v54  ;;  %v395_v1 = vsub.f32 %v374_v23, %v1194_v12  ;;  %v378_v62 = vpop.permute.xlu1 %377 }
 0x104   :  { %v296_v45 = vmul.f32 %v1274_v35, %v1274_v35  ;;  %v299_v56 = vmul.f32 %v1279_v37, %v1279_v37  ;;  %v298_v13 = vmul.f32 %v282_v39, %v282_v39  ;;  %1001 = vrsqrt.f32 %v1442_v30 }
 0x105   :  { %v1000_v22 = vpop.eup %999  ;;  %v672_v0 = vmul.f32 %v1252_v8, %v655_v36  ;;  %v722_v42 = vmul.f32 %v1262_v19, %v705_v57  ;;  %v469_v3 = vsub.f32 1.5, %v468_v59  ;;  %v1452_v25 = vadd.f32 %v408_v31, %v311_v29 }
 0x106   :  { %v526_v34 = vmul.f32 %v1000_v22, %v1419_v48  ;;  %v1456_v24 = vadd.f32 %v406_v58, %v1264_v15  ;;  %v411_v35 = vmul.f32 %v395_v1, %v395_v1  ;;  %v393_v63 = vsub.f32 %v366_v21, %v1194_v12 }
 0x107   :  { %v202_v37 = vmul.f32 %v1256_v17, %v1256_v17  ;;  %v1461_v32 = vadd.f32 %v722_v42, %v672_v0  ;;  %v470_v10 = vmul.f32 %v998_v4, %v469_v3  ;;  %1003 = vrsqrt.f32 %v1452_v25 }
 0x108   :  { %v314_v33 = vadd.f32 %v298_v13, %v1234_v53  ;;  %v527_v26 = vmul.f32 %v1000_v22, %v526_v34  ;;  %1005 = vrsqrt.f32 %v1456_v24  ;;  %v312_v43 = vadd.f32 %v296_v45, %v1241_v46 }
 0x109   :  { %v1467_v15 = vadd.f32 %v299_v56, %v202_v37  ;;  %v471_v40 = vmul.f32 %v470_v10, %v1389_v16  ;;  %vm472_vm0 = vcmp.eq.f32.partialorder %v1389_v16, inf  ;;  %v475_v17 = vand.u32 2147483648, %v1389_v16 }
 0x10a   :  { %v1002_v41 = vpop.eup %1001  ;;  %v528_v44 = vmul.f32 0.5, %v527_v26  ;;  %v1472_v52 = vadd.f32 %v411_v35, %v314_v33  ;;  %v409_v28 = vmul.f32 %v393_v63, %v393_v63  ;;  %vm474_vm1 = vcmp.eq.f32.partialorder %v1389_v16, 0.0 }
 0x10b   :  { %v473_v53 = vsel %vm472_vm0, %v1389_v16, %v471_v40  ;;  %vm532_vm2 = vcmp.eq.f32.partialorder %v1419_v48, inf  ;;  %v502_v46 = vmul.f32 %v1002_v41, %v1442_v30  ;;  %vm534_vm3 = vcmp.eq.f32.partialorder %v1419_v48, 0.0 }
 0x10c   :  { %v476_v4 = vsel %vm474_vm1, %v475_v17, %v473_v53  ;;  %v529_v61 = vsub.f32 1.5, %v528_v44  ;;  %1007 = vrsqrt.f32 %v1472_v52  ;;  %v535_v49 = vand.u32 2147483648, %v1419_v48 }
 0x10d   :  { %v1004_v60 = vpop.eup %1003  ;;  %v629_v11 = vsub.f32 %v1249_v7, %v476_v4  ;;  %v679_v38 = vsub.f32 %v476_v4, %v1259_v18  ;;  %v503_v39 = vmul.f32 %v1002_v41, %v502_v46  ;;  %vm508_vm4 = vcmp.eq.f32.partialorder %v1442_v30, inf }
 0x10e   :  { %v1006_v16 = vpop.eup %1005  ;;  %v530_v14 = vmul.f32 %v1000_v22, %v529_v61  ;;  %v511_v20 = vand.u32 2147483648, %v1442_v30  ;;  %v562_v23 = vmul.f32 %v1004_v60, %v1452_v25  ;;  %v1486_v29 = vadd.f32 %v409_v28, %v312_v43 }
 0x10f   :  { %v645_v47 = vmax.f32 %v629_v11, 0.0  ;;  %v695_v5 = vmax.f32 %v679_v38, 0.0  ;;  %v504_v54 = vmul.f32 0.5, %v503_v39  ;;  %vm510_vm5 = vcmp.eq.f32.partialorder %v1442_v30, 0.0 }
 0x110   :  { %v538_v31 = vmul.f32 %v1006_v16, %v1456_v24  ;;  %v531_v58 = vmul.f32 %v530_v14, %v1419_v48  ;;  %v563_v36 = vmul.f32 %v1004_v60, %v562_v23  ;;  %1009 = vrsqrt.f32 %v1486_v29 }
 0x111   :  { %v396_v57 = vsub.f32 %v378_v62, %v1194_v12  ;;  %v662_v59 = vmul.f32 %v1252_v8, %v645_v47  ;;  %v712_v1 = vmul.f32 %v1262_v19, %v695_v5  ;;  %v505_v21 = vsub.f32 1.5, %v504_v54 }
 0x112   :  { %vm568_vm6 = vcmp.eq.f32.partialorder %v1452_v25, inf  ;;  %v539_v45 = vmul.f32 %v1006_v16, %v538_v31  ;;  %v1008_v56 = vpop.eup %1007  ;;  %v533_v13 = vsel %vm532_vm2, %v1419_v48, %v531_v58  ;;  %v564_v22 = vmul.f32 0.5, %v563_v36 }
 0x113   :  { %vm570_vm7 = vcmp.eq.f32.partialorder %v1452_v25, 0.0  ;;  %v571_v0 = vand.u32 2147483648, %v1452_v25  ;;  %vm544_vm8 = vcmp.eq.f32.partialorder %v1456_v24, inf  ;;  %v1502_v12 = vadd.f32 %v712_v1, %v662_v59 }
 0x114   :  { %v536_v42 = vsel %vm534_vm3, %v535_v49, %v533_v13  ;;  %v506_v3 = vmul.f32 %v1002_v41, %v505_v21  ;;  %v540_v34 = vmul.f32 0.5, %v539_v45  ;;  %vm546_vm9 = vcmp.eq.f32.partialorder %v1456_v24, 0.0 }
 0x115   :  { %v634_v35 = vsub.f32 %v1249_v7, %v536_v42  ;;  %v684_v63 = vsub.f32 %v536_v42, %v1259_v18  ;;  %v565_v37 = vsub.f32 1.5, %v564_v22  ;;  %v598_v10 = vmul.f32 %v1008_v56, %v1472_v52 }
 0x116   :  { %v507_v33 = vmul.f32 %v506_v3, %v1442_v30  ;;  %v541_v26 = vsub.f32 1.5, %v540_v34  ;;  %v547_v43 = vand.u32 2147483648, %v1456_v24  ;;  %v412_v40 = vmul.f32 %v396_v57, %v396_v57  ;;  %v1010_v17 = vpop.eup %1009 }
 0x117   :  { %v650_v48 = vmax.f32 %v634_v35, 0.0  ;;  %v700_v44 = vmax.f32 %v684_v63, 0.0  ;;  %v566_v41 = vmul.f32 %v1004_v60, %v565_v37  ;;  %v599_v28 = vmul.f32 %v1008_v56, %v598_v10 }
 0x118   :  { %v509_v53 = vsel %vm508_vm4, %v1442_v30, %v507_v33  ;;  %v542_v46 = vmul.f32 %v1006_v16, %v541_v26  ;;  %v574_v4 = vmul.f32 %v1010_v17, %v1486_v29  ;;  %v1517_v61 = vadd.f32 %v412_v40, %v1467_v15 }
 0x119   :  { %v667_v11 = vmul.f32 %v1252_v8, %v650_v48  ;;  %v717_v38 = vmul.f32 %v1262_v19, %v700_v44  ;;  %v512_v49 = vsel %vm510_vm5, %v511_v20, %v509_v53  ;;  %v567_v60 = vmul.f32 %v566_v41, %v1452_v25 }
 0x11a   :  { %v632_v39 = vsub.f32 %v1249_v7, %v512_v49  ;;  %v682_v62 = vsub.f32 %v512_v49, %v1259_v18  ;;  %v543_v16 = vmul.f32 %v542_v46, %v1456_v24  ;;  %v600_v14 = vmul.f32 0.5, %v599_v28 }
 0x11b   :  { %v1527_v23 = vadd.f32 %v717_v38, %v667_v11  ;;  %v569_v15 = vsel %vm568_vm6, %v1452_v25, %v567_v60  ;;  %v575_v47 = vmul.f32 %v1010_v17, %v574_v4  ;;  %1011 = vrsqrt.f32 %v1517_v61 }
 0x11c   :  { %v648_v30 = vmax.f32 %v632_v39, 0.0  ;;  %v698_v20 = vmax.f32 %v682_v62, 0.0  ;;  %v572_v5 = vsel %vm570_vm7, %v571_v0, %v569_v15  ;;  %v545_v54 = vsel %vm544_vm8, %v1456_v24, %v543_v16 }
 0x11d   :  { %v637_v31 = vsub.f32 %v1249_v7, %v572_v5  ;;  %v687_v58 = vsub.f32 %v572_v5, %v1259_v18  ;;  %v548_v36 = vsel %vm546_vm9, %v547_v43, %v545_v54  ;;  %v601_v57 = vsub.f32 1.5, %v600_v14 }
 0x11e   :  { %v665_v59 = vmul.f32 %v1252_v8, %v648_v30  ;;  %v715_v1 = vmul.f32 %v1262_v19, %v698_v20  ;;  %v635_v21 = vsub.f32 %v1249_v7, %v548_v36  ;;  %v685_v25 = vsub.f32 %v548_v36, %v1259_v18 }
 0x11f   :  { %v653_v45 = vmax.f32 %v637_v31, 0.0  ;;  %v703_v13 = vmax.f32 %v687_v58, 0.0  ;;  %v602_v22 = vmul.f32 %v1008_v56, %v601_v57  ;;  %v576_v0 = vmul.f32 0.5, %v575_v47 }
 0x120   :  { %v1546_v42 = vadd.f32 %v715_v1, %v665_v59  ;;  %v651_v3 = vmax.f32 %v635_v21, 0.0  ;;  %v701_v34 = vmax.f32 %v685_v25, 0.0  ;;  %vm604_vm10 = vcmp.eq.f32.partialorder %v1472_v52, inf }
 0x121   :  { %v1012_v24 = vpop.eup %1011  ;;  %v670_v35 = vmul.f32 %v1252_v8, %v653_v45  ;;  %v720_v63 = vmul.f32 %v1262_v19, %v703_v13  ;;  %v603_v37 = vmul.f32 %v602_v22, %v1472_v52  ;;  %v577_v10 = vsub.f32 1.5, %v576_v0 }
 0x122   :  { %v668_v33 = vmul.f32 %v1252_v8, %v651_v3  ;;  %v718_v26 = vmul.f32 %v1262_v19, %v701_v34  ;;  %v607_v56 = vand.u32 2147483648, %v1472_v52  ;;  %v610_v43 = vmul.f32 %v1012_v24, %v1517_v61 }
 0x123   :  { %v1556_v40 = vadd.f32 %v720_v63, %v670_v35  ;;  %v605_v48 = vsel %vm604_vm10, %v1472_v52, %v603_v37  ;;  %vm606_vm11 = vcmp.eq.f32.partialorder %v1472_v52, 0.0  ;;  %v578_v44 = vmul.f32 %v1010_v17, %v577_v10 }
 0x124   :  { %v1560_v41 = vadd.f32 %v718_v26, %v668_v33  ;;  %v608_v28 = vsel %vm606_vm11, %v607_v56, %v605_v48  ;;  %v611_v53 = vmul.f32 %v1012_v24, %v610_v43  ;;  %vm580_vm12 = vcmp.eq.f32.partialorder %v1486_v29, inf }
 0x125   :  { %v640_v46 = vsub.f32 %v1249_v7, %v608_v28  ;;  %v690_v4 = vsub.f32 %v608_v28, %v1259_v18  ;;  %v579_v11 = vmul.f32 %v578_v44, %v1486_v29  ;;  %v583_v38 = vand.u32 2147483648, %v1486_v29 }
 0x126   :  { %v612_v49 = vmul.f32 0.5, %v611_v53  ;;  %vm582_vm13 = vcmp.eq.f32.partialorder %v1486_v29, 0.0  ;;  %vm616_vm14 = vcmp.eq.f32.partialorder %v1517_v61, inf  ;;  %v619_v36 = vand.u32 2147483648, %v1517_v61 }
 0x127   :  { %v656_v60 = vmax.f32 %v640_v46, 0.0  ;;  %v706_v39 = vmax.f32 %v690_v4, 0.0  ;;  %v581_v52 = vsel %vm580_vm12, %v1486_v29, %v579_v11  ;;  %vm618_vm15 = vcmp.eq.f32.partialorder %v1517_v61, 0.0 }
 0x128   :  { %v584_v17 = vsel %vm582_vm13, %v583_v38, %v581_v52  ;;  %v613_v62 = vsub.f32 1.5, %v612_v49 }
 0x129   :  { %v673_v16 = vmul.f32 %v1252_v8, %v656_v60  ;;  %v723_v14 = vmul.f32 %v1262_v19, %v706_v39  ;;  %v638_v15 = vsub.f32 %v1249_v7, %v584_v17  ;;  %v688_v47 = vsub.f32 %v584_v17, %v1259_v18 }
 0x12a   :  { %v614_v30 = vmul.f32 %v1012_v24, %v613_v62 }
 0x12b   :  { %v1573_v20 = vadd.f32 %v723_v14, %v673_v16  ;;  %v654_v5 = vmax.f32 %v638_v15, 0.0  ;;  %v704_v54 = vmax.f32 %v688_v47, 0.0 }
 0x12c   :  { %v615_v31 = vmul.f32 %v614_v30, %v1517_v61 }
 0x12d   :  { %v671_v58 = vmul.f32 %v1252_v8, %v654_v5  ;;  %v721_v29 = vmul.f32 %v1262_v19, %v704_v54 }
 0x12e   :  { %v617_v57 = vsel %vm616_vm14, %v1517_v61, %v615_v31 }
 0x12f   :  { %v1582_v59 = vadd.f32 %v721_v29, %v671_v58  ;;  %v620_v1 = vsel %vm618_vm15, %v619_v36, %v617_v57 }
 0x130   :  { %v641_v21 = vsub.f32 %v1249_v7, %v620_v1  ;;  %v691_v25 = vsub.f32 %v620_v1, %v1259_v18 }
 0x132   :  { %v657_v45 = vmax.f32 %v641_v21, 0.0  ;;  %v707_v13 = vmax.f32 %v691_v25, 0.0  ;;  %746 = sbr.rel (%p1184_p4) target bundleno = 521 (0x209), region = 21 }
 0x134   :  { %v674_v22 = vmul.f32 %v1252_v8, %v657_v45  ;;  %v724_v0 = vmul.f32 %v1262_v19, %v707_v13 }
 0x136   :  { %v1588_v3 = vadd.f32 %v724_v0, %v674_v22 }
 0x137   :  { %v747_v61 = vadd.f32 %v1422_v55, %v1381_v9 }
 0x139   :  { %v748_v34 = vadd.f32 %v747_v61, %v1315_v27 }
 0x13b   :  { %v749_v7 = vadd.f32 %v748_v34, %v1502_v12 }
 0x13d   :  { %v750_v18 = vadd.f32 %v749_v7, %v1345_v6 }
 0x13f   :  { %v751_v24 = vadd.f32 %v750_v18, %v1439_v51 }
 0x141   :  { %v752_v8 = vadd.f32 %v751_v24, %v1546_v42 }
 0x143   :  { %v753_v19 = vadd.f32 %v752_v8, %v1374_v2 }
 0x145   :  { %v754_v35 = vadd.f32 %v753_v19, %v1527_v23 }
 0x147   :  { %v755_v63 = vadd.f32 %v754_v35, %v1560_v41 }
 0x149   :  { %v756_v37 = vadd.f32 %v755_v63, %v1408_v50 }
 0x14b   :  { %v757_v10 = vadd.f32 %v756_v37, %v1556_v40 }
 0x14d   :  { %v758_v33 = vadd.f32 %v757_v10, %v1582_v59 }
 0x14f   :  { %v759_v26 = vadd.f32 %v758_v33, %v1461_v32 }
 0x151   :  { %v760_v56 = vadd.f32 %v759_v26, %v1573_v20 }
 0x153   :  { %v761_v43 = vadd.f32 %v760_v56, %v1588_v3 }
 0x155   :  { %762 = vadd.xlane.f32.xlu0 %v761_v43 }
 0x1c8   :  { %v763_v48 = vpop.xlane.xlu0 %762 }
 0x1c9   :  { %v764_v44 = vrot.slane %v763_v48, 4 }
 0x1cb   :  { %v765_v28 = vadd.f32 %v764_v44, %v763_v48 }
 0x1cd   :  { %v766_v53 = vrot.slane %v765_v28, 2 }
 0x1cf   :  { %v767_v46 = vadd.f32 %v766_v53, %v765_v28 }
 0x1d1   :  { %v768_v4 = vrot.slane %v767_v46, 1 }
 0x1d3   :  { %v769_v11 = vadd.f32 %v768_v4, %v767_v46 }
 0x1d5   :  { %961 = vpush %v769_v11 }
 0x206   :  { %s962_s25 = spop %961 }
 0x207   :  { %v771_v38 = vstv %s962_s25 }
 0x208   :  { %772 = vst [vmem:[#allocation8] sm:$0xff] %v771_v38 }
 0x209 PF:  { %p773_p5 = scmp.eq.s32.totalorder %s1788_s1, 0 }
 0x20b   :  { %p774_p6 = pnand %p773_p5, %p741_p2 }
 0x20d   :  { %777 = sbr.rel (%p774_p6) target bundleno = 746 (0x2ea), region = 25 }
 0x212   :  { %v778_v49 = vlaneseq }
 0x214   :  { %v779_v60 = vand.u32 127, %v778_v49 }
 0x216   :  { %vm780_vm0 = vcmp.lt.s32.totalorder %v779_v60, 16 }
 0x217   :  { %v781_v39 = vsel %vm780_vm0, %v1381_v9, 0.0  ;;  %v782_v52 = vsel %vm780_vm0, %v1422_v55, 0.0  ;;  %v783_v17 = vsel %vm780_vm0, %v1315_v27, 0.0  ;;  %v784_v16 = vsel %vm780_vm0, %v1502_v12, 0.0 }
 0x218   :  { %v797_v62 = vadd.f32 %v782_v52, %v781_v39  ;;  %v785_v15 = vsel %vm780_vm0, %v1345_v6, 0.0  ;;  %v786_v30 = vsel %vm780_vm0, %v1439_v51, 0.0  ;;  %v787_v54 = vsel %vm780_vm0, %v1546_v42, 0.0 }
 0x219   :  { %v788_v58 = vsel %vm780_vm0, %v1374_v2, 0.0  ;;  %v789_v36 = vsel %vm780_vm0, %v1527_v23, 0.0  ;;  %v790_v1 = vsel %vm780_vm0, %v1560_v41, 0.0  ;;  %v791_v25 = vsel %vm780_vm0, %v1408_v50, 0.0 }
 0x21a   :  { %v798_v14 = vadd.f32 %v797_v62, %v783_v17  ;;  %v792_v13 = vsel %vm780_vm0, %v1556_v40, 0.0  ;;  %v793_v0 = vsel %vm780_vm0, %v1582_v59, 0.0  ;;  %v794_v34 = vsel %vm780_vm0, %v1461_v32, 0.0 }
 0x21b   :  { %v795_v18 = vsel %vm780_vm0, %v1573_v20, 0.0  ;;  %v796_v8 = vsel %vm780_vm0, %v1588_v3, 0.0 }
 0x21c   :  { %v799_v47 = vadd.f32 %v798_v14, %v784_v16 }
 0x21e   :  { %v800_v5 = vadd.f32 %v799_v47, %v785_v15 }
 0x220   :  { %v801_v31 = vadd.f32 %v800_v5, %v786_v30 }
 0x222   :  { %v802_v29 = vadd.f32 %v801_v31, %v787_v54 }
 0x224   :  { %v803_v57 = vadd.f32 %v802_v29, %v788_v58 }
 0x226   :  { %v804_v21 = vadd.f32 %v803_v57, %v789_v36 }
 0x228   :  { %v805_v45 = vadd.f32 %v804_v21, %v790_v1 }
 0x22a   :  { %v806_v22 = vadd.f32 %v805_v45, %v791_v25 }
 0x22c   :  { %v807_v61 = vadd.f32 %v806_v22, %v792_v13 }
 0x22e   :  { %v808_v7 = vadd.f32 %v807_v61, %v793_v0 }
 0x230   :  { %v809_v24 = vadd.f32 %v808_v7, %v794_v34 }
 0x232   :  { %v810_v19 = vadd.f32 %v809_v24, %v795_v18 }
 0x234   :  { %v811_v35 = vadd.f32 %v810_v19, %v796_v8 }
 0x236   :  { %812 = vadd.xlane.f32.xlu0 %v811_v35 }
 0x2a9   :  { %v813_v63 = vpop.xlane.xlu0 %812 }
 0x2aa   :  { %v814_v37 = vrot.slane %v813_v63, 4 }
 0x2ac   :  { %v815_v10 = vadd.f32 %v814_v37, %v813_v63 }
 0x2ae   :  { %v816_v33 = vrot.slane %v815_v10, 2 }
 0x2b0   :  { %v817_v26 = vadd.f32 %v816_v33, %v815_v10 }
 0x2b2   :  { %v818_v56 = vrot.slane %v817_v26, 1 }
 0x2b4   :  { %v819_v43 = vadd.f32 %v818_v56, %v817_v26 }
 0x2b6   :  { %963 = vpush %v819_v43 }
 0x2e7   :  { %s964_s30 = spop %963 }
 0x2e8   :  { %v821_v48 = vstv %s964_s30 }
 0x2e9   :  { %822 = vst [vmem:[#allocation8] sm:$0xff] %v821_v48 }
 0x2ea PF:  { %p959_p7 = scmp.ne.s32.totalorder %s1788_s1, %s1787_s0 }
 0x2eb   :  { %s960_s11 = sshll.u32 (!%p959_p7), %s1787_s0, 7 }
 0x2ec   :  { %826 = sbr.rel (%p959_p7) target bundleno = 972 (0x3cc), region = 29  ;;  %s847_s12 = ssub.s32 (!%p959_p7), 16, %s960_s11 }
 0x2f1   :  { %v827_v44 = vlaneseq  ;;  %v864_v38 = vstv %s847_s12 }
 0x2f3   :  { %v1656_v28 = vshrl.u32 %v827_v44, 7  ;;  %v1661_v53 = vand.u32 127, %v827_v44 }
 0x2f5   :  { %v829_v46 = vadd.s32 8, %v1656_v28  ;;  %v830_v4 = vadd.s32 16, %v1656_v28  ;;  %v831_v11 = vadd.s32 24, %v1656_v28  ;;  %v832_v49 = vadd.s32 32, %v1656_v28 }
 0x2f6   :  { %vm848_vm1 = vcmp.gt.s32.totalorder %v1661_v53, %v1656_v28  ;;  %v833_v60 = vadd.s32 40, %v1656_v28  ;;  %vm1673_vm4 = vcmp.lt.s32.totalorder %v1661_v53, %v864_v38  ;;  %v834_v52 = vadd.s32 48, %v1656_v28 }
 0x2f7   :  { %vm849_vm2 = vcmp.gt.s32.totalorder %v1661_v53, %v829_v46  ;;  %vm850_vm3 = vcmp.gt.s32.totalorder %v1661_v53, %v830_v4  ;;  %vm851_vm5 = vcmp.gt.s32.totalorder %v1661_v53, %v831_v11  ;;  %vm866_vm6 = vmand %vm848_vm1, %vm1673_vm4  ;;  %vm852_vm7 = vcmp.gt.s32.totalorder %v1661_v53, %v832_v49 }
 0x2f8   :  { %vm867_vm8 = vmand %vm849_vm2, %vm1673_vm4  ;;  %v882_v17 = vsel %vm866_vm6, %v1381_v9, 0.0  ;;  %v835_v62 = vadd.s32 56, %v1656_v28  ;;  %vm853_vm9 = vcmp.gt.s32.totalorder %v1661_v53, %v833_v60  ;;  %v836_v47 = vadd.s32 64, %v1656_v28 }
 0x2f9   :  { %vm868_vm10 = vmand %vm850_vm3, %vm1673_vm4  ;;  %v883_v16 = vsel %vm867_vm8, %v1422_v55, 0.0  ;;  %vm854_vm12 = vcmp.gt.s32.totalorder %v1661_v53, %v834_v52  ;;  %v837_v5 = vadd.s32 72, %v1656_v28  ;;  %v838_v31 = vadd.s32 80, %v1656_v28 }
 0x2fa   :  { %vm869_vm11 = vmand %vm851_vm5, %vm1673_vm4  ;;  %v884_v14 = vsel %vm868_vm10, %v1315_v27, 0.0  ;;  %v898_v15 = vadd.f32 %v883_v16, %v882_v17  ;;  %vm855_vm15 = vcmp.gt.s32.totalorder %v1661_v53, %v835_v62  ;;  %vm856_vm1 = vcmp.gt.s32.totalorder %v1661_v53, %v836_v47 }
 0x2fb   :  { %vm870_vm13 = vmand %vm852_vm7, %vm1673_vm4  ;;  %v885_v9 = vsel %vm869_vm11, %v1502_v12, 0.0  ;;  %v839_v36 = vadd.s32 88, %v1656_v28  ;;  %vm857_vm3 = vcmp.gt.s32.totalorder %v1661_v53, %v837_v5  ;;  %v840_v21 = vadd.s32 96, %v1656_v28 }
 0x2fc   :  { %vm1700_vm14 = vmand %vm853_vm9, %vm1673_vm4  ;;  %v899_v55 = vadd.f32 %v898_v15, %v884_v14  ;;  %v886_v27 = vsel %vm870_vm13, %v1345_v6, 0.0  ;;  %vm858_vm6 = vcmp.gt.s32.totalorder %v1661_v53, %v838_v31  ;;  %v841_v13 = vadd.s32 104, %v1656_v28 }
 0x2fd   :  { %vm1709_vm0 = vmand %vm854_vm12, %vm1673_vm4  ;;  %v887_v58 = vsel %vm1700_vm14, %v1439_v51, 0.0  ;;  %vm859_vm8 = vcmp.gt.s32.totalorder %v1661_v53, %v839_v36  ;;  %v842_v61 = vadd.s32 112, %v1656_v28  ;;  %vm860_vm10 = vcmp.gt.s32.totalorder %v1661_v53, %v840_v21 }
 0x2fe   :  { %v900_v12 = vadd.f32 %v899_v55, %v885_v9  ;;  %vm1720_vm2 = vmand %vm855_vm15, %vm1673_vm4  ;;  %v888_v57 = vsel %vm1709_vm0, %v1546_v42, 0.0  ;;  %vm861_vm12 = vcmp.gt.s32.totalorder %v1661_v53, %v841_v13 }
 0x2ff   :  { %vm1731_vm5 = vmand %vm856_vm1, %vm1673_vm4  ;;  %v889_v25 = vsel %vm1720_vm2, %v1374_v2, 0.0  ;;  %vm862_vm14 = vcmp.gt.s32.totalorder %v1661_v53, %v842_v61 }
 0x300   :  { %v901_v6 = vadd.f32 %v900_v12, %v886_v27  ;;  %vm1742_vm7 = vmand %vm857_vm3, %vm1673_vm4  ;;  %v890_v22 = vsel %vm1731_vm5, %v1527_v23, 0.0  ;;  %v843_v23 = vadd.s32 120, %v1656_v28 }
 0x301   :  { %vm1753_vm9 = vmand %vm858_vm6, %vm1673_vm4  ;;  %v891_v34 = vsel %vm1742_vm7, %v1560_v41, 0.0 }
 0x302   :  { %v902_v51 = vadd.f32 %v901_v6, %v887_v58  ;;  %vm877_vm11 = vmand %vm859_vm8, %vm1673_vm4  ;;  %v892_v18 = vsel %vm1753_vm9, %v1408_v50, 0.0  ;;  %vm863_vm0 = vcmp.gt.s32.totalorder %v1661_v53, %v843_v23 }
 0x303   :  { %vm878_vm13 = vmand %vm860_vm10, %vm1673_vm4  ;;  %v893_v41 = vsel %vm877_vm11, %v1556_v40, 0.0 }
 0x304   :  { %v903_v42 = vadd.f32 %v902_v51, %v888_v57  ;;  %vm879_vm15 = vmand %vm861_vm12, %vm1673_vm4  ;;  %v894_v19 = vsel %vm878_vm13, %v1582_v59, 0.0 }
 0x305   :  { %vm880_vm1 = vmand %vm862_vm14, %vm1673_vm4  ;;  %v895_v35 = vsel %vm879_vm15, %v1461_v32, 0.0 }
 0x306   :  { %v904_v2 = vadd.f32 %v903_v42, %v889_v25  ;;  %vm881_vm2 = vmand %vm863_vm0, %vm1673_vm4  ;;  %v896_v40 = vsel %vm880_vm1, %v1573_v20, 0.0 }
 0x307   :  { %v897_v10 = vsel %vm881_vm2, %v1588_v3, 0.0 }
 0x308   :  { %v905_v7 = vadd.f32 %v904_v2, %v890_v22 }
 0x30a   :  { %v906_v24 = vadd.f32 %v905_v7, %v891_v34 }
 0x30c   :  { %v907_v8 = vadd.f32 %v906_v24, %v892_v18 }
 0x30e   :  { %v908_v50 = vadd.f32 %v907_v8, %v893_v41 }
 0x310   :  { %v909_v63 = vadd.f32 %v908_v50, %v894_v19 }
 0x312   :  { %v910_v37 = vadd.f32 %v909_v63, %v895_v35 }
 0x314   :  { %v911_v33 = vadd.f32 %v910_v37, %v896_v40 }
 0x316   :  { %v912_v26 = vadd.f32 %v911_v33, %v897_v10 }
 0x318   :  { %913 = vadd.xlane.f32.xlu0 %v912_v26 }
 0x38b   :  { %v914_v56 = vpop.xlane.xlu0 %913 }
 0x38c   :  { %v915_v59 = vrot.slane %v914_v56, 4 }
 0x38e   :  { %v916_v43 = vadd.f32 %v915_v59, %v914_v56 }
 0x390   :  { %v917_v48 = vrot.slane %v916_v43, 2 }
 0x392   :  { %v918_v44 = vadd.f32 %v917_v48, %v916_v43 }
 0x394   :  { %v919_v28 = vrot.slane %v918_v44, 1 }
 0x396   :  { %v920_v53 = vadd.f32 %v919_v28, %v918_v44 }
 0x398   :  { %965 = vpush %v920_v53 }
 0x3c9   :  { %s966_s0 = spop %965 }
 0x3ca   :  { %v922_v32 = vstv %s966_s0 }
 0x3cb   :  { %923 = vst [vmem:[#allocation8] sm:$0xff] %v922_v32 }
 0x3cc PF:  { %s931_s14 = sshll.u32 %s1792_s5, 4  ;;  %s1057_s15 = smov [#allocation8]   ;;  %s932_s14 = int_to_ptr.hbm [resolvable:$true] %s931_s14 }
 0x3cd   :  { %s929_s16 = sshll.u32 %s1057_s15, 4  ;;  %s930_s16 = int_to_ptr.vmem [resolvable:$true] %s929_s16 }
 0x3ce   :  { %934 = dma.vmem_to_hbm [thread:$0]  %s930_s16, 128, %s932_s14, [#allocation6]  }
 0x3cf   :  { %1051 = dma.done.wait [#allocation6], 128  }
 0x3d0   :  { %1052 = vsyncadd [#allocation6], 4294967168 }
 0x3d1   :  { %939 = vsyncpa [#allocation6], 1 }
 0x3d2   :  { %940 = vsyncpa [#allocation7], 1 }

</bundles_post_ra>
